<compile_context>
chip_gen: v5e
topology: v5e:2x2
jax: 0.10.0
libtpu: 0.0.40
codegen_flags: <defaults>
</compile_context>

<pallas_src>
import functools

import jax
import jax.numpy as jnp
from jax.experimental import pallas as pl
from jax.experimental.pallas import tpu as pltpu


def _epe_partial_kernel(out_ref, tgt_ref, part_ref, *,
                        C, crop_h, crop_w, th, H, W, first_blk, aligned_fold):
    t = pl.program_id(1)

    # Sum of squared channel differences, accumulated channel-by-channel so the
    # live f32 temporaries stay at one (th, W) slab instead of C of them.
    sq = jnp.zeros((th, W), jnp.float32)
    for ch in range(C):
        d = tgt_ref[0, ch].astype(jnp.float32) - out_ref[0, ch].astype(jnp.float32)
        sq = sq + d * d
    epe = jnp.sqrt(sq)                                # (th, W)

    # Crop mask in global coordinates (rows of this tile start at row0).
    # Boundary tiles (and any rows read past H in a partial last tile) are
    # zeroed here; for interior tiles the mask is cheap VPU filler.
    row0 = (first_blk + t) * th
    rows = row0 + jax.lax.broadcasted_iota(jnp.int32, (th, W), 0)
    cols = jax.lax.broadcasted_iota(jnp.int32, (th, W), 1)
    mask = ((rows >= crop_h) & (rows < H - crop_h)
            & (cols >= crop_w) & (cols < W - crop_w))
    masked = jnp.where(mask, epe, 0.0)

    if aligned_fold:
        # Two-level tile-aligned fold: (th, W) -> (8, W) -> (8, 128).
        # Pure elementwise VPU adds on (8,128)-aligned slices; no per-step
        # cross-lane XLU reduce, and the traced op count is th//8 + W//128.
        stripe = masked[0:8, :]
        for hb in range(1, th // 8):
            stripe = stripe + masked[hb * 8:(hb + 1) * 8, :]
        acc = stripe[:, 0:128]
        for wb in range(1, W // 128):
            acc = acc + stripe[:, wb * 128:(wb + 1) * 128]
    else:
        # Shapes not (8,128)-aligned (e.g. tiny test inputs): full reduce and
        # place the scalar in lane (0,0) of the partial block.
        total = jnp.sum(masked)
        r = jax.lax.broadcasted_iota(jnp.int32, (8, 128), 0)
        c = jax.lax.broadcasted_iota(jnp.int32, (8, 128), 1)
        acc = jnp.where((r == 0) & (c == 0), total, 0.0)

    part_ref[...] = acc.reshape(1, 1, 8, 128)


def epe_loss(output: jax.Array, target: jax.Array, mean: bool = True) -> jax.Array:
    """End-point-error loss (sparse=False)."""
    # TODO(synk): sparse=True branch (data-dependent ragged masking of epe_map)
    # has no clean static-shape Pallas equivalent and is not implemented.
    assert output.shape == target.shape
    N, C, H, W = output.shape
    crop_h = int(0.1 * H)
    crop_w = int(0.1 * W)
    # Note: when crop becomes 0 (H or W < 10) PyTorch's [0:-0] slice is EMPTY
    # (NaN mean); here we keep the full map instead (deliberate divergence).

    # --- row-tile size: ~2 MiB per input tile, sublane-aligned for the dtype,
    #     capped at 2048 rows to bound the unrolled stripe fold.
    itemsize = jnp.dtype(output.dtype).itemsize
    sub = {4: 8, 2: 16, 1: 32}.get(itemsize, 8)
    bytes_per_row = max(C * W * itemsize, 1)
    th = ((2 << 20) // bytes_per_row) // sub * sub
    th = min(th, 2048)
    th = max(th, sub)
    if th >= H:
        th = H  # full-extent block is always allowed

    # --- only DMA the row-tiles that intersect the cropped region.
    first_blk = crop_h // th
    last_blk = pl.cdiv(max(H - crop_h, 1), th)
    n_row_tiles = max(last_blk - first_blk, 1)

    aligned_fold = (th % 8 == 0) and (W % 128 == 0)

    kernel = functools.partial(
        _epe_partial_kernel, C=C,
        crop_h=crop_h, crop_w=crop_w, th=th, H=H, W=W,
        first_blk=first_blk, aligned_fold=aligned_fold)

    partials = pl.pallas_call(
        kernel,
        out_shape=jax.ShapeDtypeStruct((N, n_row_tiles, 8, 128), jnp.float32),
        grid_spec=pltpu.PrefetchScalarGridSpec(
            num_scalar_prefetch=0,
            grid=(N, n_row_tiles),
            in_specs=[
                pl.BlockSpec((1, C, th, W), lambda b, t: (b, 0, first_blk + t, 0)),
                pl.BlockSpec((1, C, th, W), lambda b, t: (b, 0, first_blk + t, 0)),
            ],
            out_specs=pl.BlockSpec((1, 1, 8, 128), lambda b, t: (b, t, 0, 0)),
        ),
        compiler_params=pltpu.CompilerParams(
            # Per-grid-point partial outputs -> no cross-step state -> both
            # axes parallel (v7x megacore can shard; no-op on v5e/v6e).
            dimension_semantics=("parallel", "parallel"),
            # ~8 MiB double-buffered inputs + f32 temporaries; raise the v5e
            # 16 MiB default scoped limit, stay well under every chip's VMEM.
            vmem_limit_bytes=32 * 1024 * 1024,
        ),
    )(output, target)

    total = jnp.sum(partials)
    cropped_h = H - 2 * crop_h
    cropped_w = W - 2 * crop_w
    denom = N * cropped_h * cropped_w if mean else N
    return (total / jnp.float32(denom)).astype(jnp.float32)


def epe_loss_reference(output: jax.Array, target: jax.Array,
                       mean: bool = True) -> jax.Array:
    """Pure-JAX reference mirroring the PyTorch forward (sparse=False)."""
    diff = target.astype(jnp.float32) - output.astype(jnp.float32)
    epe_map = jnp.sqrt(jnp.sum(diff * diff, axis=1))
    N, H, W = epe_map.shape
    ch, cw = int(0.1 * H), int(0.1 * W)
    epe_map = epe_map[:, ch: H - ch, cw: W - cw]
    if mean:
        return jnp.mean(epe_map)
    return jnp.sum(epe_map) / N


if __name__ == "__main__":
    key = jax.random.PRNGKey(0)
    k1, k2, k3, k4 = jax.random.split(key, 4)

    # Flow tensors: batch=2, channels=2 (u, v displacement), spatial=16x16.
    # Small unaligned shape -> exercises the scalar-reduce fallback path.
    out_s = jax.random.normal(k1, (2, 2, 16, 16), dtype=jnp.float32)
    tgt_s = jax.random.normal(k2, (2, 2, 16, 16), dtype=jnp.float32)

    loss_s = epe_loss(out_s, tgt_s)
    jax.block_until_ready(loss_s)
    ref_s = epe_loss_reference(out_s, tgt_s)
    assert jnp.allclose(loss_s, ref_s, rtol=1e-5, atol=1e-5), (loss_s, ref_s)

    # mean=False branch (sum / batch_size).
    loss_sum = epe_loss(out_s, tgt_s, mean=False)
    jax.block_until_ready(loss_sum)
    ref_sum = epe_loss_reference(out_s, tgt_s, mean=False)
    assert jnp.allclose(loss_sum, ref_sum, rtol=1e-5, atol=1e-5), (loss_sum, ref_sum)

    # (8,128)-aligned shape -> exercises the VPU stripe-fold fast path.
    out_a = jax.random.normal(k3, (2, 2, 64, 256), dtype=jnp.float32)
    tgt_a = jax.random.normal(k4, (2, 2, 64, 256), dtype=jnp.float32)
    loss_a = epe_loss(out_a, tgt_a)
    jax.block_until_ready(loss_a)
    ref_a = epe_loss_reference(out_a, tgt_a)
    assert jnp.allclose(loss_a, ref_a, rtol=1e-5, atol=1e-5), (loss_a, ref_a)

    print("KERNEL_OK")
</pallas_src>

<mosaic_0001>
module attributes {stable_mosaic.version = 11 : i64} {
  func.func @_epe_partial_kernel(%arg0: i32, %arg1: i32, %arg2: memref<1x2x16x16xf32, #tpu.memory_space<vmem>>, %arg3: memref<1x2x16x16xf32, #tpu.memory_space<vmem>>, %arg4: memref<1x1x8x128xf32, #tpu.memory_space<vmem>>) attributes {dimension_semantics = [#tpu.dimension_semantics<parallel>, #tpu.dimension_semantics<parallel>], iteration_bounds = array<i64: 2, 1>, scalar_prefetch = 0 : i64, scratch_operands = 0 : i64, tpu.core_type = #tpu.core_type<tc>, window_params = [{transform_indices = @transform_0, window_bounds = array<i64: 1, 2, 16, 16>}, {transform_indices = @transform_1, window_bounds = array<i64: 1, 2, 16, 16>}, {transform_indices = @transform_2, window_bounds = array<i64: 1, 1, 8, 128>}]} {
    %cst = arith.constant 0.000000e+00 : f32
    %0 = vector.broadcast %cst : f32 to vector<16x16xf32>
    %c0 = arith.constant 0 : index
    %c0_0 = arith.constant 0 : index
    %c0_1 = arith.constant 0 : index
    %c0_2 = arith.constant 0 : index
    %1 = vector.load %arg3[%c0, %c0_0, %c0_1, %c0_2] : memref<1x2x16x16xf32, #tpu.memory_space<vmem>>, vector<1x1x16x16xf32>
    %2 = vector.shape_cast %1 : vector<1x1x16x16xf32> to vector<16x16xf32>
    %c0_3 = arith.constant 0 : index
    %c0_4 = arith.constant 0 : index
    %c0_5 = arith.constant 0 : index
    %c0_6 = arith.constant 0 : index
    %3 = vector.load %arg2[%c0_3, %c0_4, %c0_5, %c0_6] : memref<1x2x16x16xf32, #tpu.memory_space<vmem>>, vector<1x1x16x16xf32>
    %4 = vector.shape_cast %3 : vector<1x1x16x16xf32> to vector<16x16xf32>
    %5 = arith.subf %2, %4 : vector<16x16xf32>
    %6 = arith.mulf %5, %5 : vector<16x16xf32>
    %7 = arith.addf %0, %6 : vector<16x16xf32>
    %c0_7 = arith.constant 0 : index
    %c1 = arith.constant 1 : index
    %c0_8 = arith.constant 0 : index
    %c0_9 = arith.constant 0 : index
    %8 = vector.load %arg3[%c0_7, %c1, %c0_8, %c0_9] : memref<1x2x16x16xf32, #tpu.memory_space<vmem>>, vector<1x1x16x16xf32>
    %9 = vector.shape_cast %8 : vector<1x1x16x16xf32> to vector<16x16xf32>
    %c0_10 = arith.constant 0 : index
    %c1_11 = arith.constant 1 : index
    %c0_12 = arith.constant 0 : index
    %c0_13 = arith.constant 0 : index
    %10 = vector.load %arg2[%c0_10, %c1_11, %c0_12, %c0_13] : memref<1x2x16x16xf32, #tpu.memory_space<vmem>>, vector<1x1x16x16xf32>
    %11 = vector.shape_cast %10 : vector<1x1x16x16xf32> to vector<16x16xf32>
    %12 = arith.subf %9, %11 : vector<16x16xf32>
    %13 = arith.mulf %12, %12 : vector<16x16xf32>
    %14 = arith.addf %7, %13 : vector<16x16xf32>
    %15 = math.sqrt %14 : vector<16x16xf32>
    %c0_i32 = arith.constant 0 : i32
    %16 = arith.addi %c0_i32, %arg1 : i32
    %c16_i32 = arith.constant 16 : i32
    %17 = arith.muli %16, %c16_i32 : i32
    %18 = tpu.iota {dimensions = array<i32: 0>} : vector<16x16xi32>
    %19 = vector.broadcast %17 : i32 to vector<16x16xi32>
    %20 = arith.addi %19, %18 : vector<16x16xi32>
    %21 = tpu.iota {dimensions = array<i32: 1>} : vector<16x16xi32>
    %c1_i32 = arith.constant 1 : i32
    %22 = vector.broadcast %c1_i32 : i32 to vector<16x16xi32>
    %23 = arith.cmpi sge, %20, %22 : vector<16x16xi32>
    %c15_i32 = arith.constant 15 : i32
    %24 = vector.broadcast %c15_i32 : i32 to vector<16x16xi32>
    %25 = arith.cmpi slt, %20, %24 : vector<16x16xi32>
    %26 = arith.andi %23, %25 : vector<16x16xi1>
    %c1_i32_14 = arith.constant 1 : i32
    %27 = vector.broadcast %c1_i32_14 : i32 to vector<16x16xi32>
    %28 = arith.cmpi sge, %21, %27 : vector<16x16xi32>
    %29 = arith.andi %26, %28 : vector<16x16xi1>
    %c15_i32_15 = arith.constant 15 : i32
    %30 = vector.broadcast %c15_i32_15 : i32 to vector<16x16xi32>
    %31 = arith.cmpi slt, %21, %30 : vector<16x16xi32>
    %32 = arith.andi %29, %31 : vector<16x16xi1>
    %cst_16 = arith.constant 0.000000e+00 : f32
    %33 = vector.broadcast %cst_16 : f32 to vector<16x16xf32>
    %34 = arith.select %32, %15, %33 : vector<16x16xi1>, vector<16x16xf32>
    %35 = vector.shape_cast %34 : vector<16x16xf32> to vector<1x16x16xf32>
    %cst_17 = arith.constant dense<0.000000e+00> : vector<1xf32>
    %36 = vector.multi_reduction <add>, %35, %cst_17 [1, 2] : vector<1x16x16xf32> to vector<1xf32>
    %37 = vector.shape_cast %36 : vector<1xf32> to vector<1x1x1xf32>
    %38 = vector.extract %37[0, 0, 0] : f32 from vector<1x1x1xf32>
    %39 = tpu.iota {dimensions = array<i32: 0>} : vector<8x128xi32>
    %40 = tpu.iota {dimensions = array<i32: 1>} : vector<8x128xi32>
    %c0_i32_18 = arith.constant 0 : i32
    %41 = vector.broadcast %c0_i32_18 : i32 to vector<8x128xi32>
    %42 = arith.cmpi eq, %39, %41 : vector<8x128xi32>
    %c0_i32_19 = arith.constant 0 : i32
    %43 = vector.broadcast %c0_i32_19 : i32 to vector<8x128xi32>
    %44 = arith.cmpi eq, %40, %43 : vector<8x128xi32>
    %45 = arith.andi %42, %44 : vector<8x128xi1>
    %cst_20 = arith.constant 0.000000e+00 : f32
    %46 = vector.broadcast %38 : f32 to vector<8x128xf32>
    %47 = vector.broadcast %cst_20 : f32 to vector<8x128xf32>
    %48 = arith.select %45, %46, %47 : vector<8x128xi1>, vector<8x128xf32>
    %49 = vector.shape_cast %48 : vector<8x128xf32> to vector<1x1x8x128xf32>
    %c0_21 = arith.constant 0 : index
    %c0_22 = arith.constant 0 : index
    %c0_23 = arith.constant 0 : index
    %c0_24 = arith.constant 0 : index
    %50 = vector.load %arg4[%c0_21, %c0_22, %c0_23, %c0_24] : memref<1x1x8x128xf32, #tpu.memory_space<vmem>>, vector<1x1x8x128xf32>
    tpu.vector_store %arg4[%c0_21, %c0_22, %c0_23, %c0_24], %49 {strides = array<i32>} : memref<1x1x8x128xf32, #tpu.memory_space<vmem>>, vector<1x1x8x128xf32>,
    return
  }
  func.func @transform_0(%arg0: i32, %arg1: i32) -> (i32, i32, i32, i32) {
    %c0_i32 = arith.constant 0 : i32
    %0 = arith.addi %c0_i32, %arg1 : i32
    %c0_i32_0 = arith.constant 0 : i32
    %c0_i32_1 = arith.constant 0 : i32
    %c0_i32_2 = arith.constant 0 : i32
    return %arg0, %c0_i32_0, %0, %c0_i32_1 : i32, i32, i32, i32
  }
  func.func @transform_1(%arg0: i32, %arg1: i32) -> (i32, i32, i32, i32) {
    %c0_i32 = arith.constant 0 : i32
    %0 = arith.addi %c0_i32, %arg1 : i32
    %c0_i32_0 = arith.constant 0 : i32
    %c0_i32_1 = arith.constant 0 : i32
    %c0_i32_2 = arith.constant 0 : i32
    return %arg0, %c0_i32_0, %0, %c0_i32_1 : i32, i32, i32, i32
  }
  func.func @transform_2(%arg0: i32, %arg1: i32) -> (i32, i32, i32, i32) {
    %c0_i32 = arith.constant 0 : i32
    %c0_i32_0 = arith.constant 0 : i32
    %c0_i32_1 = arith.constant 0 : i32
    return %arg0, %arg1, %c0_i32, %c0_i32_0 : i32, i32, i32, i32
  }
}

</mosaic_0001>

<bundles_post_ra>
// kernel: tpu_custom_call.1
= control target key start
LH: loop header
LB: loop body
LE: loop exit
PB: predicated region body
PF: predicated region fallthrough
CT: control target
= control target key end

     0   :  { %7 = vsyncpa [#allocation3], 0  ;;  %s849_s0 = inlined_call_operand.hbm [shape: f32[2,2,16,16], index: 0, kind: input, shape index: {}]   ;;  %s850_s1 = inlined_call_operand.hbm [shape: f32[2,2,16,16], index: 1, kind: input, shape index: {}]   ;;  %s851_s2 = inlined_call_operand.hbm [shape: f32[2,1,8,128], index: 2, kind: output, shape index: {}]  }
   0x1   :  { %9 = vsyncpa [#allocation3 + $0x1], 0 }
   0x2   :  { %10 = vsyncpa [#allocation6], 0 }
   0x3   :  { %12 = vsyncpa [#allocation6 + $0x1], 0 }
   0x4   :  { %13 = vsyncpa [#allocation4], 0 }
   0x5   :  { %15 = vsyncpa [#allocation4 + $0x1], 0  ;;  %s707_s9 = smov 0   ;;  %s709_s10 = smov 0  }
   0x6   :  { %s711_s11 = smov 0   ;;  %s713_s12 = smov 0  }
   0x7   :  { %s715_s13 = smov 0   ;;  %s717_s14 = smov 0  }
   0x8 LB: > { %s443_s15 = sadd.s32 4294967295, %s688_s14   ;;  %s444_s16 = sadd.s32 4294967294, %s688_s14   ;;  %s688_s14 = sphi %s717_s14, %s21_s14   ;;  %s684_s13 = sphi %s715_s13, %s861_s13   ;;  %s680_s12 = sphi %s713_s12, %s860_s12   ;;  %s676_s11 = sphi %s711_s11, %s859_s11   ;;  %s672_s10 = sphi %s709_s10, %s858_s10   ;;  %s668_s9 = sphi %s707_s9, %s857_s9  }
   0x9   : > { %s33_s17 = sadd.s32 1, %s684_s13  ;;  %s42_s18 = sadd.s32 1, %s676_s11 }
   0xa   : > { %p35_p0 = scmp.ge.s32.totalorder %s33_s17, 2  ;;  %p49_p1 = scmp.ne.s32.totalorder %s676_s11, %s672_s10 }
   0xb   : > { %p50_p2 = scmp.eq.s32.totalorder %s688_s14, 0  ;;  %p55_p3 = scmp.ne.s32.totalorder %s672_s10, %s668_s9 }
   0xc   : > { %s863_s17 = smov (%p35_p0, %s33_s17), 0  ;;  %p56_p5 = scmp.eq.s32.totalorder %s443_s15, 0 }
   0xd   : > { %p748_p4 = por %p50_p2, %p49_p1  ;;  %s37_s20 = ssub.s32 %s684_s13, %s863_s17 }
   0xe   : > { %p109_p6 = scmp.eq.s32.totalorder %s443_s15, 1  ;;  %p40_p7 = scmp.eq.s32.totalorder %s37_s20, 0 }
   0xf   : > { %p754_p8 = por %p56_p5, %p55_p3  ;;  %p115_p10 = scmp.eq.s32.totalorder %s444_s16, 1 }
  0x10   : > { %p758_p9 = por %p109_p6, %p49_p1  ;;  %p446_p12 = scmp.ge.s32.totalorder %s688_s14, 2 }
  0x11   : > { %s763_s23 = scalar_select %p40_p7, %s676_s11, %s42_s18  }
  0x12   : > { %p765_p11 = por %p115_p10, %p55_p3  ;;  %p486_p13 = scmp.lt.s32.totalorder %s688_s14, 2 }
  0x13   : > { %s772_s25 = sand.u32 1, %s676_s11   ;;  %s465_s27 = sshll.u32 %s684_s13, 5 }
  0x14   : > { %s447_s26 = sshll.u32 %s772_s25, 5  ;;  %s146_s30 = scalar_lea.hbm %s849_s0, %s465_s27 }
  0x15   : > { %s139_s3 = scalar_lea.vmem [#allocation2], %s447_s26  ;;  %s147_s5 = sshll.u32 %s146_s30, 4  ;;  %s148_s5 = int_to_ptr.hbm [resolvable:$true] %s147_s5 }
  0x16   : > { %s149_s4 = sshll.u32 %s139_s3, 4  ;;  %p781_p0 = pnand %p486_p13, %p748_p4  ;;  %s150_s4 = int_to_ptr.vmem [resolvable:$true] %s149_s4 }
  0x17   : > { %p453_p1 = scmp.ge.s32.totalorder %s688_s14, 1  ;;  %s136_s7 = scalar_lea.sflag [#allocation3], %s772_s25 }
  0x18   : > { %s690_s8 = smov 128   ;;  %s691_s15 = smov 8  }
  0x19   : > { %478 = dma.hbm_to_vmem [thread:$0]  (!%p781_p0), %s148_s5, 512, %s150_s4, %s136_s7, %s690_s8, %s690_s8, %s691_s15  }
  0x1a   : > { %p181_p2 = scmp.lt.s32.totalorder %s688_s14, 3  ;;  %s170_s20 = scalar_lea.hbm %s850_s1, %s465_s27 }
  0x1b   : > { %s171_s28 = sshll.u32 %s170_s20, 4  ;;  %s163_s19 = scalar_lea.vmem [#allocation5], %s447_s26  ;;  %s172_s28 = int_to_ptr.hbm [resolvable:$true] %s171_s28 }
  0x1c   : > { %p182_p3 = pnand %p453_p1, %p181_p2  ;;  %s173_s29 = sshll.u32 %s163_s19, 4  ;;  %s174_s29 = int_to_ptr.vmem [resolvable:$true] %s173_s29 }
  0x1d   : > { %s160_s30 = scalar_lea.sflag [#allocation6], %s772_s25  ;;  %s797_s3 = sand.u32 (!%p182_p3), 1, %s672_s10  }
  0x1e   : > { %481 = dma.hbm_to_vmem [thread:$0]  (!%p781_p0), %s172_s28, 512, %s174_s29, %s160_s30, %s690_s8, %s690_s8, %s691_s15  }
  0x1f   : > { %185 = sbr.rel (%p182_p3) target bundleno = 257 (0x101), region = 28  ;;  %s454_s4 = sshll.u32 (!%p182_p3), %s797_s3, 5 }
  0x20   : > { %s188_s5 = scalar_lea.sflag (!%p182_p3), [#allocation3], %s797_s3  ;;  %s191_s7 = scalar_lea.vmem (!%p182_p3), [#allocation2], %s454_s4 }
  0x24   : > { %655 = dma.done.wait (%p754_p8), %s188_s5, 512  }
  0x25   : > { %657 = vsyncadd (%p754_p8), %s188_s5, 4294966784  ;;  %s198_s25 = scalar_lea.sflag [#allocation6], %s797_s3  ;;  %s201_s26 = scalar_lea.vmem [#allocation5], %s454_s4 }
  0x26   : > { %659 = dma.done.wait (%p754_p8), %s198_s25, 512  }
  0x27   : > { %661 = vsyncadd (%p754_p8), %s198_s25, 4294966784  ;;  %v230_v0 = vld [vmem:[%s201_s26] sm:$0xff]  ;;  %v231_v1 = vld [vmem:[%s201_s26 + $0x8] sm:$0xff]  ;;  %v277_v18 = vlaneseq  ;;  %vm299_vm12 = vcmask 130048   ;;  %s456_s21 = sshll.u32 %s797_s3, 3  ;;  %s462_s27 = sshll.u32 %s680_s12, 3 }
  0x28   : > { %v232_v2 = vld [vmem:[%s191_s7] sm:$0xff]  ;;  %v233_v3 = vld [vmem:[%s191_s7 + $0x8] sm:$0xff]  ;;  %v457_v5 = vld [vmem:[%s201_s26 + $0x10] sm:$0xff]  ;;  %s330_s15 = scalar_lea.hbm %s851_s2, %s462_s27  ;;  %s227_s16 = scalar_lea.vmem [#allocation7], %s456_s21 }
  0x29   : > { %v234_v4 = vsub.f32 %v230_v0, %v232_v2  ;;  %v458_v6 = vld [vmem:[%s201_s26 + $0x18] sm:$0xff]  ;;  %v235_v7 = vsub.f32 %v231_v1, %v233_v3  ;;  %v459_v8 = vld [vmem:[%s191_s7 + $0x10] sm:$0xff]  ;;  %v278_v19 = vshrl.u32 %v277_v18, 7  ;;  %v284_v24 = vand.u32 127, %v277_v18  ;;  %s332_s18 = sshll.u32 %s227_s16, 4  ;;  %s334_s20 = sshll.u32 %s330_s15, 4  ;;  %s333_s18 = int_to_ptr.vmem [resolvable:$true] %s332_s18  ;;  %s335_s20 = int_to_ptr.hbm [resolvable:$true] %s334_s20 }
  0x2a   : > { %v460_v9 = vld [vmem:[%s191_s7 + $0x18] sm:$0xff]  ;;  %v246_v11 = vsub.f32 %v457_v5, %v459_v8  ;;  %s319_s19 = scalar_lea.sflag [#allocation4], %s797_s3  ;;  %s616_s29 = sshra.s32 %s335_s20, 4  ;;  %s617_s29 = int_to_ptr.hbm [resolvable:$true] %s616_s29 }
  0x2b   : > { %v236_v10 = vmul.f32 %v234_v4, %v234_v4  ;;  %v247_v12 = vsub.f32 %v458_v6, %v460_v9  ;;  %v237_v13 = vmul.f32 %v235_v7, %v235_v7  ;;  %v279_v26 = vadd.s32 8, %v278_v19  ;;  %s618_s12 = scalar_lea.hbm %s617_s29, 8  ;;  %s622_s5 = scalar_lea.hbm %s851_s2, 16 }
  0x2c   : > { %v248_v14 = vmul.f32 %v246_v11, %v246_v11  ;;  %vm285_vm0 = vcmp.ge.s32.totalorder %v278_v19, 1  ;;  %vm291_vm1 = vcmp.ge.s32.totalorder %v284_v24, 1  ;;  %vm294_vm4 = vcmp.lt.s32.totalorder %v284_v24, 15  ;;  %p619_p4 = scmp.ne.s32.totalorder %s617_s29, %s618_s12  ;;  %p623_p7 = scmp.lt.s32.totalorder %s617_s29, %s851_s2 }
  0x2d   : > { %v249_v15 = vmul.f32 %v247_v12, %v247_v12  ;;  %vm288_vm2 = vcmp.lt.s32.totalorder %v279_v26, 15  ;;  %vm292_vm3 = vmand %vm285_vm0, %vm291_vm1  ;;  %vm312_vm13 = vcmp.eq.s32.totalorder %v278_v19, 0  ;;  %vm313_vm14 = vcmp.eq.s32.totalorder %v284_v24, 0  ;;  %p624_p8 = scmp.lt.s32.totalorder %s622_s5, %s618_s12 }
  0x2e   : > { %v250_v16 = vadd.f32 %v248_v14, %v236_v10  ;;  %vm293_vm6 = vmand %vm288_vm2, %vm291_vm1  ;;  %p620_p5 = pnand %p619_p4, %p758_p9 }
  0x2f   : > { %v251_v17 = vadd.f32 %v249_v15, %v237_v13  ;;  %vm295_vm10 = vmand %vm292_vm3, %vm294_vm4  ;;  %p625_p10 = por %p624_p8, %p623_p7 }
  0x30   : > { %538 = vrsqrt.f32 %v250_v16  ;;  %vm259_vm5 = vcmp.eq.f32.partialorder %v250_v16, inf  ;;  %v262_v33 = vand.u32 2147483648, %v250_v16  ;;  %vm261_vm7 = vcmp.eq.f32.partialorder %v250_v16, 0.0  ;;  %vm296_vm11 = vmand %vm293_vm6, %vm294_vm4  ;;  %p621_p6 = pneg %p620_p5 }
  0x31   : > { %540 = vrsqrt.f32 %v251_v17  ;;  %vm271_vm8 = vcmp.eq.f32.partialorder %v251_v17, inf  ;;  %v274_v36 = vand.u32 2147483648, %v251_v17  ;;  %vm273_vm9 = vcmp.eq.f32.partialorder %v251_v17, 0.0  ;;  %vm314_vm15 = vmand %vm312_vm13, %vm313_vm14 }
  0x32   : > { %p626_p13 = pnand %p625_p10, %p621_p6 }
  0x36   : > { %v539_v20 = vpop.eup %538 }
  0x37   : > { %v541_v21 = vpop.eup %540  ;;  %v253_v22 = vmul.f32 %v539_v20, %v250_v16 }
  0x38   : > { %v265_v23 = vmul.f32 %v541_v21, %v251_v17 }
  0x39   : > { %v254_v25 = vmul.f32 %v539_v20, %v253_v22 }
  0x3a   : > { %v266_v27 = vmul.f32 %v541_v21, %v265_v23 }
  0x3b   : > { %v255_v28 = vmul.f32 0.5, %v254_v25 }
  0x3c   : > { %v267_v29 = vmul.f32 0.5, %v266_v27 }
  0x3d   : > { %v256_v30 = vsub.f32 1.5, %v255_v28 }
  0x3e   : > { %v268_v31 = vsub.f32 1.5, %v267_v29 }
  0x3f   : > { %v257_v32 = vmul.f32 %v539_v20, %v256_v30 }
  0x40   : > { %v269_v34 = vmul.f32 %v541_v21, %v268_v31 }
  0x41   : > { %v258_v35 = vmul.f32 %v257_v32, %v250_v16 }
  0x42   : > { %v270_v37 = vmul.f32 %v269_v34, %v251_v17 }
  0x43   : > { %v260_v38 = vsel %vm259_vm5, %v250_v16, %v258_v35 }
  0x44   : > { %v263_v39 = vsel %vm261_vm7, %v262_v33, %v260_v38  ;;  %v272_v40 = vsel %vm271_vm8, %v251_v17, %v270_v37 }
  0x45   : > { %v275_v41 = vsel %vm273_vm9, %v274_v36, %v272_v40  ;;  %v297_v42 = vsel %vm295_vm10, %v263_v39, 0.0 }
  0x46   : > { %v298_v43 = vsel %vm296_vm11, %v275_v41, 0.0  ;;  %v300_v44 = vsel %vm299_vm12, %v297_v42, 0.0 }
  0x47   : > { %v301_v45 = vsel %vm299_vm12, %v298_v43, 0.0 }
  0x48   : > { %v302_v46 = vadd.f32 %v301_v45, %v300_v44 }
  0x4a   : > { %303 = vadd.xlane.f32.xlu0 %v302_v46 }
  0xbd   : > { %v304_v47 = vpop.xlane.xlu0 %303 }
  0xbe   : > { %v305_v48 = vrot.slane %v304_v47, 4 }
  0xc0   : > { %v306_v49 = vadd.f32 %v305_v48, %v304_v47 }
  0xc2   : > { %v307_v50 = vrot.slane %v306_v49, 2 }
  0xc4   : > { %v308_v51 = vadd.f32 %v307_v50, %v306_v49 }
  0xc6   : > { %v309_v52 = vrot.slane %v308_v51, 1 }
  0xc8   : > { %v310_v53 = vadd.f32 %v309_v52, %v308_v51 }
  0xca   : > { %467 = vpush %v310_v53 }
  0xfb   : > { %s468_s28 = spop %467 }
  0xfc   : > { %v315_v54 = vstv %s468_s28 }
  0xfd   : > { %v316_v55 = vsel %vm314_vm15, %v315_v54, 0.0 }
  0xfe   : > { %317 = vst [vmem:[%s227_s16] sm:$0xff] %v316_v55 }
  0xff   : > { %629 = shalt.err (!%p626_p13)
}
 0x100   : > { %473 = dma.vmem_to_hbm [thread:$0]  (%p758_p9), %s333_s18, 128, %s335_s20, %s319_s19  }
 0x101 PF: > { %s346_s3 = sand.u32 1, %s668_s9   ;;  %p483_p0 = pnand %p446_p12, %p765_p11 }
 0x102   : > { %s347_s26 = scalar_lea.sflag [#allocation4], %s346_s3 }
 0x103   : > { %p484_p1 = pneg %p483_p0 }
 0x105   : > { %663 = dma.done.wait (%p484_p1), %s347_s26, 128  }
 0x106   : > { %665 = vsyncadd (%p484_p1), %s347_s26, 4294967168  ;;  %s21_s14 = sadd.s32 1, %s688_s14   ;;  %s857_s9 = smov %s672_s10 }
 0x107   : > { %p18_p2 = scmp.ge.s32.totalorder %s21_s14, 4   ;;  %s858_s10 = smov %s676_s11 }
 0x108   : > { %s859_s11 = smov %s763_s23  ;;  %s860_s12 = smov %s684_s13 }
 0x109   : > { %s861_s13 = smov %s863_s17  ;;  %20 = sbr.rel (!%p18_p2) target bundleno = 8 (0x8), region = 88 }
 0x10e   :  { %353 = vsyncpa [#allocation3], 1 }
 0x10f   :  { %355 = vsyncpa [#allocation3 + $0x1], 1 }
 0x110   :  { %356 = vsyncpa [#allocation6], 1 }
 0x111   :  { %358 = vsyncpa [#allocation6 + $0x1], 1 }
 0x112   :  { %359 = vsyncpa [#allocation4], 1 }
 0x113   :  { %361 = vsyncpa [#allocation4 + $0x1], 1 }

</bundles_post_ra>
